<compile_context>
chip_gen: v7x
topology: tpu7x:2x2x1
jax: 0.10.0
libtpu: 0.0.40
codegen_flags: <defaults>
</compile_context>

<pallas_src>
import functools

import jax
import jax.numpy as jnp
from jax.experimental import pallas as pl
from jax.experimental.pallas import tpu as pltpu

LANE = 128  # padded output / hidden width (one full lane tile)


def act_mlp_kernel(x_ref, wcat_ref, bcat_ref, w2_ref, out_ref, *, out_dim):
    """Fused simple-Linear + (Linear->ReLU->Linear) + add + softmax on one batch tile.

    wcat = [Ws_pad | W1_pad]       (in_dim, 2*LANE)  bf16
    bcat = [(bs+b2)_pad | b1_pad]  (1, 2*LANE)       f32  (zero padding)
    w2   = W2 zero-padded to (LANE, LANE)            bf16
    """
    x = x_ref[...].astype(jnp.bfloat16)             # in-kernel cast (VPU), no wrapper pass

    # MXU pass 1: simple branch + hidden pre-activations in one lane-dense push.
    z = jnp.dot(x, wcat_ref[...],
                preferred_element_type=jnp.float32) + bcat_ref[...]   # (TB, 256) f32
    simple = z[:, :LANE]                    # x @ Ws + bs + b2
    h = jnp.maximum(z[:, LANE:], 0.0)       # relu(x @ W1 + b1), f32

    # MXU pass 2: deep-branch output accumulated onto the simple branch.
    logits = simple + jnp.dot(h.astype(jnp.bfloat16), w2_ref[...],
                              preferred_element_type=jnp.float32)     # (TB, 128) f32

    # Numerically stable masked softmax over the real out_dim columns only.
    col = jax.lax.broadcasted_iota(jnp.int32, logits.shape, 1)
    valid = col < out_dim
    logits = jnp.where(valid, logits, -1e30)
    m = jnp.max(logits, axis=1, keepdims=True)
    e = jnp.where(valid, jnp.exp(logits - m), 0.0)
    denom = jnp.sum(e, axis=1, keepdims=True)
    out_ref[...] = (e / denom).astype(out_ref.dtype)   # exact divide: rows sum to 1


def pack_params(ws, bs, w1, b1, w2, b2):
    """Pad / fuse the weights once (hoisted out of the per-call path).

    Weights stored as (in_features, out_features); biases as (1, out_features).
    """
    in_dim, out_dim = ws.shape
    hidden = w1.shape[1]
    assert out_dim <= LANE and hidden <= LANE

    ws_p = jnp.zeros((in_dim, LANE), jnp.float32).at[:, :out_dim].set(ws)
    w1_p = jnp.zeros((in_dim, LANE), jnp.float32).at[:, :hidden].set(w1)
    wcat = jnp.concatenate([ws_p, w1_p], axis=1).astype(jnp.bfloat16)   # (in_dim, 256)

    b_out = jnp.zeros((1, LANE), jnp.float32).at[:, :out_dim].set(bs + b2)
    b_hid = jnp.zeros((1, LANE), jnp.float32).at[:, :hidden].set(b1)
    bcat = jnp.concatenate([b_out, b_hid], axis=1)                      # (1, 256) f32

    w2_p = (jnp.zeros((LANE, LANE), jnp.float32)
            .at[:hidden, :out_dim].set(w2)).astype(jnp.bfloat16)        # (128, 128)
    return wcat, bcat, w2_p, out_dim


def act_mlp_forward(x, wcat, bcat, w2_p, out_dim, *, trim=True):
    """Categorical probabilities.

    trim=True  -> (B, out_dim) (module-faithful)
    trim=False -> (B, 128) lane-dense padded slab (skips one wrapper HBM pass
                  when the consumer can take it directly).
    """
    B, in_dim = x.shape
    assert wcat.shape[0] == in_dim

    # ---- batch tiling --------------------------------------------------------
    SMALL_B = 1024
    if B <= SMALL_B:
        # One grid step, whole batch resident in VMEM: no per-step overhead,
        # no padding needed (block == full array dims is always legal).
        TB, n_blocks = B, 1
    else:
        # Fat ~512-row tiles; even block count so ("parallel",) splits the
        # batch evenly across v7x's two TensorCores with >=2 steps per core.
        nb = pl.cdiv(B, 512)
        if nb % 2:
            nb += 1
        TB = ((pl.cdiv(B, nb) + 7) // 8) * 8        # sublane (8) aligned
        n_blocks = pl.cdiv(B, TB)                   # re-derive: no empty tiles
        # Ragged last block: OOB input rows are computed on unspecified data
        # (rows are independent) and their output writes are masked by Pallas.

    cost = pl.CostEstimate(
        flops=2 * B * in_dim * (2 * LANE) + 2 * B * LANE * LANE,
        transcendentals=B * LANE,
        bytes_accessed=(x.size * 4 + wcat.size * 2 + bcat.size * 4
                        + w2_p.size * 2 + B * LANE * 4),
    )

    probs_pad = pl.pallas_call(
        functools.partial(act_mlp_kernel, out_dim=out_dim),
        out_shape=jax.ShapeDtypeStruct((B, LANE), jnp.float32),
        grid=(n_blocks,),
        in_specs=[
            pl.BlockSpec((TB, in_dim), lambda i: (i, 0)),        # x tile (pipelined)
            pl.BlockSpec((in_dim, 2 * LANE), lambda i: (0, 0)),  # wcat   (resident)
            pl.BlockSpec((1, 2 * LANE), lambda i: (0, 0)),       # bcat   (resident)
            pl.BlockSpec((LANE, LANE), lambda i: (0, 0)),        # w2     (resident)
        ],
        out_specs=pl.BlockSpec((TB, LANE), lambda i: (i, 0)),
        compiler_params=pltpu.CompilerParams(
            dimension_semantics=("parallel",),
            vmem_limit_bytes=32 * 1024 * 1024,
        ),
        cost_estimate=cost,
    )(x, wcat, bcat, w2_p)

    return probs_pad[:, :out_dim] if trim else probs_pad


def init_params(key, in_dim, out_dim, hidden_dim):
    """Deterministic parameter init. Weights stored as (in_features, out_features)."""
    k = jax.random.split(key, 6)
    scale = 0.1
    ws = scale * jax.random.normal(k[0], (in_dim, out_dim), jnp.float32)
    bs = scale * jax.random.normal(k[1], (1, out_dim), jnp.float32)
    w1 = scale * jax.random.normal(k[2], (in_dim, hidden_dim), jnp.float32)
    b1 = scale * jax.random.normal(k[3], (1, hidden_dim), jnp.float32)
    w2 = scale * jax.random.normal(k[4], (hidden_dim, out_dim), jnp.float32)
    b2 = scale * jax.random.normal(k[5], (1, out_dim), jnp.float32)
    return ws, bs, w1, b1, w2, b2


def reference_forward_f32(x, ws, bs, w1, b1, w2, b2):
    simple = x @ ws + bs
    deep = jnp.maximum(x @ w1 + b1, 0.0) @ w2 + b2
    return jax.nn.softmax(simple + deep, axis=1)


def reference_forward_bf16(x, ws, bs, w1, b1, w2, b2):
    """Same math as the kernel (bf16 matmuls, f32 accumulation/softmax)."""
    xb = x.astype(jnp.bfloat16)
    simple = jnp.dot(xb, ws.astype(jnp.bfloat16),
                     preferred_element_type=jnp.float32) + (bs + b2)
    h = jnp.maximum(jnp.dot(xb, w1.astype(jnp.bfloat16),
                            preferred_element_type=jnp.float32) + b1, 0.0)
    deep = jnp.dot(h.astype(jnp.bfloat16), w2.astype(jnp.bfloat16),
                   preferred_element_type=jnp.float32)
    return jax.nn.softmax(simple + deep, axis=1)


if __name__ == "__main__":
    # TODO(synk): torch.distributions.Categorical (sampling/log_prob) has no Pallas
    # equivalent; the kernel returns the softmax probabilities that parameterize it.
    B, in_dim, hidden_dim, out_dim = 256, 32, 64, 8

    key = jax.random.PRNGKey(0)
    kx, kp = jax.random.split(key)
    x = jax.random.normal(kx, (B, in_dim), jnp.float32)
    params = init_params(kp, in_dim, out_dim, hidden_dim)

    packed = pack_params(*params)            # weight packing paid once, reused per call
    probs = act_mlp_forward(x, *packed)
    probs = jax.block_until_ready(probs)

    assert probs.shape == (B, out_dim)
    # exact divide -> rows sum to 1 within f32 rounding
    assert jnp.allclose(jnp.sum(probs, axis=1), 1.0, atol=1e-3)
    # matches a pure-JAX reference using identical bf16 matmul precision
    ref_bf16 = reference_forward_bf16(x, *params)
    assert jnp.allclose(probs, ref_bf16, atol=2e-3, rtol=2e-3)
    # and the full-f32 reference within bf16 rounding
    ref_f32 = reference_forward_f32(x, *params)
    assert jnp.allclose(probs, ref_f32, atol=3e-2)

    print("KERNEL_OK")
</pallas_src>

<mosaic_0001>
module attributes {stable_mosaic.version = 11 : i64} {
  func.func @act_mlp_kernel(%arg0: i32, %arg1: memref<256x32xf32, #tpu.memory_space<vmem>>, %arg2: memref<32x256xbf16, #tpu.memory_space<vmem>>, %arg3: memref<1x256xf32, #tpu.memory_space<vmem>>, %arg4: memref<128x128xbf16, #tpu.memory_space<vmem>>, %arg5: memref<256x128xf32, #tpu.memory_space<vmem>>) attributes {dimension_semantics = [#tpu.dimension_semantics<parallel>], iteration_bounds = array<i64: 1>, scalar_prefetch = 0 : i64, scratch_operands = 0 : i64, tpu.core_type = #tpu.core_type<tc>, window_params = [{transform_indices = @transform_0, window_bounds = array<i64: 256, 32>}, {pipeline_mode = #tpu.pipeline_mode<synchronous>, transform_indices = @transform_1, window_bounds = array<i64: 32, 256>}, {pipeline_mode = #tpu.pipeline_mode<synchronous>, transform_indices = @transform_2, window_bounds = array<i64: 1, 256>}, {pipeline_mode = #tpu.pipeline_mode<synchronous>, transform_indices = @transform_3, window_bounds = array<i64: 128, 128>}, {transform_indices = @transform_4, window_bounds = array<i64: 256, 128>}]} {
    %c0 = arith.constant 0 : index
    %c0_0 = arith.constant 0 : index
    %0 = vector.load %arg1[%c0, %c0_0] : memref<256x32xf32, #tpu.memory_space<vmem>>, vector<256x32xf32>
    %1 = arith.truncf %0 : vector<256x32xf32> to vector<256x32xbf16>
    %c0_1 = arith.constant 0 : index
    %c0_2 = arith.constant 0 : index
    %2 = vector.load %arg2[%c0_1, %c0_2] : memref<32x256xbf16, #tpu.memory_space<vmem>>, vector<32x256xbf16>
    %cst = arith.constant dense<0.000000e+00> : vector<256x256xf32>
    %3 = tpu.matmul %1, %2, %cst {dimension_numbers = #tpu.dot_dimension_numbers<[1], [0], [0], [1], [0, 0, 1, 1], [], []>} : vector<256x32xbf16>, vector<32x256xbf16>, vector<256x256xf32> -> vector<256x256xf32>
    %c0_3 = arith.constant 0 : index
    %c0_4 = arith.constant 0 : index
    %4 = vector.load %arg3[%c0_3, %c0_4] : memref<1x256xf32, #tpu.memory_space<vmem>>, vector<1x256xf32>
    %5 = vector.broadcast %4 : vector<1x256xf32> to vector<256x256xf32>
    %6 = arith.addf %3, %5 : vector<256x256xf32>
    %7 = vector.extract_strided_slice %6 {offsets = [0, 0], sizes = [256, 128], strides = [1, 1]} : vector<256x256xf32> to vector<256x128xf32>
    %8 = vector.extract_strided_slice %6 {offsets = [0, 128], sizes = [256, 128], strides = [1, 1]} : vector<256x256xf32> to vector<256x128xf32>
    %cst_5 = arith.constant 0.000000e+00 : f32
    %9 = vector.broadcast %cst_5 : f32 to vector<256x128xf32>
    %10 = arith.maximumf %8, %9 : vector<256x128xf32>
    %11 = arith.truncf %10 : vector<256x128xf32> to vector<256x128xbf16>
    %c0_6 = arith.constant 0 : index
    %c0_7 = arith.constant 0 : index
    %12 = vector.load %arg4[%c0_6, %c0_7] : memref<128x128xbf16, #tpu.memory_space<vmem>>, vector<128x128xbf16>
    %cst_8 = arith.constant dense<0.000000e+00> : vector<256x128xf32>
    %13 = tpu.matmul %11, %12, %cst_8 {dimension_numbers = #tpu.dot_dimension_numbers<[1], [0], [0], [1], [0, 0, 1, 1], [], []>} : vector<256x128xbf16>, vector<128x128xbf16>, vector<256x128xf32> -> vector<256x128xf32>
    %14 = arith.addf %7, %13 : vector<256x128xf32>
    %15 = tpu.iota {dimensions = array<i32: 1>} : vector<256x128xi32>
    %c8_i32 = arith.constant 8 : i32
    %16 = vector.broadcast %c8_i32 : i32 to vector<256x128xi32>
    %17 = arith.cmpi slt, %15, %16 : vector<256x128xi32>
    %cst_9 = arith.constant -1.000000e+30 : f32
    %18 = vector.broadcast %cst_9 : f32 to vector<256x128xf32>
    %19 = arith.select %17, %14, %18 : vector<256x128xi1>, vector<256x128xf32>
    %cst_10 = arith.constant dense<0xFF800000> : vector<256xf32>
    %20 = vector.multi_reduction <maximumf>, %19, %cst_10 [1] : vector<256x128xf32> to vector<256xf32>
    %21 = vector.shape_cast %20 : vector<256xf32> to vector<256x1xf32>
    %22 = vector.broadcast %21 : vector<256x1xf32> to vector<256x128xf32>
    %23 = arith.subf %19, %22 : vector<256x128xf32>
    %24 = math.exp %23 : vector<256x128xf32>
    %cst_11 = arith.constant 0.000000e+00 : f32
    %25 = vector.broadcast %cst_11 : f32 to vector<256x128xf32>
    %26 = arith.select %17, %24, %25 : vector<256x128xi1>, vector<256x128xf32>
    %cst_12 = arith.constant dense<0.000000e+00> : vector<256xf32>
    %27 = vector.multi_reduction <add>, %26, %cst_12 [1] : vector<256x128xf32> to vector<256xf32>
    %28 = vector.shape_cast %27 : vector<256xf32> to vector<256x1xf32>
    %29 = vector.broadcast %28 : vector<256x1xf32> to vector<256x128xf32>
    %30 = arith.divf %26, %29 : vector<256x128xf32>
    %c0_13 = arith.constant 0 : index
    %c0_14 = arith.constant 0 : index
    %31 = vector.load %arg5[%c0_13, %c0_14] : memref<256x128xf32, #tpu.memory_space<vmem>>, vector<256x128xf32>
    tpu.vector_store %arg5[%c0_13, %c0_14], %30 {strides = array<i32>} : memref<256x128xf32, #tpu.memory_space<vmem>>, vector<256x128xf32>,
    return
  }
  func.func @transform_0(%arg0: i32) -> (i32, i32) {
    %c0_i32 = arith.constant 0 : i32
    %c0_i32_0 = arith.constant 0 : i32
    return %arg0, %c0_i32 : i32, i32
  }
  func.func @transform_1(%arg0: i32) -> (i32, i32) {
    %c0_i32 = arith.constant 0 : i32
    %c0_i32_0 = arith.constant 0 : i32
    %c0_i32_1 = arith.constant 0 : i32
    return %c0_i32, %c0_i32_0 : i32, i32
  }
  func.func @transform_2(%arg0: i32) -> (i32, i32) {
    %c0_i32 = arith.constant 0 : i32
    %c0_i32_0 = arith.constant 0 : i32
    %c0_i32_1 = arith.constant 0 : i32
    return %c0_i32, %c0_i32_0 : i32, i32
  }
  func.func @transform_3(%arg0: i32) -> (i32, i32) {
    %c0_i32 = arith.constant 0 : i32
    %c0_i32_0 = arith.constant 0 : i32
    %c0_i32_1 = arith.constant 0 : i32
    return %c0_i32, %c0_i32_0 : i32, i32
  }
  func.func @transform_4(%arg0: i32) -> (i32, i32) {
    %c0_i32 = arith.constant 0 : i32
    %c0_i32_0 = arith.constant 0 : i32
    return %arg0, %c0_i32 : i32, i32
  }
}

</mosaic_0001>

<bundles_post_ra>
// kernel: tpu_custom_call.1
= control target key start
LH: loop header
LB: loop body
LE: loop exit
PB: predicated region body
PF: predicated region fallthrough
CT: control target
= control target key end

     0   :  { %v1327_v2 = vmov 0   ;;  %vm103_vm0 = vcmask 261120   ;;  %s2108_s0 = inlined_call_operand.vmem [shape: f32[256,32], index: 0, kind: input, shape index: {}]   ;;  %s2109_s1 = inlined_call_operand.vmem [shape: bf16[32,256], index: 1, kind: input, shape index: {}]   ;;  %s2110_s2 = inlined_call_operand.vmem [shape: f32[1,256], index: 2, kind: input, shape index: {}]   ;;  %s2111_s3 = inlined_call_operand.vmem [shape: bf16[128,128], index: 3, kind: input, shape index: {}]   ;;  %s2112_s4 = inlined_call_operand.hbm [shape: f32[256,128], index: 4, kind: output, shape index: {}]  }
   0x1   :  { %v1161_v0 = vld [vmem:[%s2109_s1 + $0x4] ss:$8 sps:$4 sm:$0xff]   ;;  %v1163_v1 = vld [vmem:[%s2109_s1] ss:$8 sps:$4 sm:$0xff]   ;;  %184 = vmatprep.mubr.bf16.mxu0 %v1327_v2  ;;  %304 = vmatprep.mubr.bf16.mxu1 %v1327_v2  ;;  %v1164_v3 = vld [vmem:[%s2109_s1 + $0x14] ss:$8 sps:$4 sm:$0xff]  }
   0x2   :  { %152 = vmatprep.subr.bf16.mxu0 %v1161_v0  ;;  %1153 = vmatprep.subr.bf16.mxu1 %v1161_v0  ;;  %v1166_v4 = vld [vmem:[%s2109_s1 + $0x10] ss:$8 sps:$4 sm:$0xff]   ;;  %v19_v5 = vld [vmem:[%s2108_s0] sm:$0xff]  ;;  %v20_v6 = vld [vmem:[%s2108_s0 + $0x8] sm:$0xff] }
   0x3   :  { %153 = vmatpush1.bf16.msra.mxu0 %v1163_v1  ;;  %1155 = vmatpush1.bf16.msra.mxu1 %v1163_v1  ;;  %v51_v7 = vpack.c.bf16 %v20_v6, %v19_v5  ;;  %v43_v8 = vld [vmem:[%s2108_s0 + $0xc0] sm:$0xff]  ;;  %v44_v9 = vld [vmem:[%s2108_s0 + $0xc8] sm:$0xff]  ;;  %v21_v11 = vld [vmem:[%s2108_s0 + $0x10] sm:$0xff] }
   0x4   :  { %154 = vmatprep.subr.bf16.mxu0 %v1164_v3  ;;  %1154 = vmatprep.subr.bf16.mxu1 %v1164_v3  ;;  %v63_v10 = vpack.c.bf16 %v44_v9, %v43_v8  ;;  %v22_v12 = vld [vmem:[%s2108_s0 + $0x18] sm:$0xff]  ;;  %v45_v13 = vld [vmem:[%s2108_s0 + $0xd0] sm:$0xff]  ;;  %v1167_v16 = vld [vmem:[%s2111_s3] sm:$0xff]  }
   0x5   :  { %v46_v14 = vld [vmem:[%s2108_s0 + $0xd8] sm:$0xff]  ;;  %v52_v15 = vpack.c.bf16 %v22_v12, %v21_v11  ;;  %v1168_v17 = vld [vmem:[%s2111_s3 + $0x8] sm:$0xff]   ;;  %v23_v19 = vld [vmem:[%s2108_s0 + $0x20] sm:$0xff] }
   0x6   :  { %v64_v18 = vpack.c.bf16 %v46_v14, %v45_v13  ;;  %v24_v20 = vld [vmem:[%s2108_s0 + $0x28] sm:$0xff]  ;;  %v1169_v21 = vld [vmem:[%s2111_s3 + $0x10] sm:$0xff]  }
   0x7   :  { %155 = vmatpush1.bf16.msra.mxu0 %v1166_v4  ;;  %1156 = vmatpush1.bf16.msra.mxu1 %v1166_v4 }
   0x8   :  { %1105 = vmatprep.subr.bf16.mxu1 %v1167_v16 }
   0xa   :  { %1057 = vmatmul.mubr.msk.bf16.vlgmr.msra.gmra.mrb[0].mxu0 %vm103_vm0, %v51_v7  ;;  %1069 = vmatmul.mubr.msk.bf16.vlgmr.msra.gmra.mrb[0].mxu1 %vm103_vm0, %v63_v10 }
   0xb   :  { %194 = vmatprep.mubr.bf16.mxu0 %v1327_v2  ;;  %314 = vmatprep.mubr.bf16.mxu1 %v1327_v2 }
   0xc   :  { %1106 = vmatpush3.bf16.msra.mxu1 %v1167_v16 }
   0xd   :  { %1107 = vmatprep.subr.bf16.mxu1 %v1168_v17 }
  0x12   :  { %1058 = vmatmul.mubr.msk.bf16.gmra.mrb[4].mxu0 %vm103_vm0, %v52_v15  ;;  %1070 = vmatmul.mubr.msk.bf16.gmra.mrb[4].mxu1 %vm103_vm0, %v64_v18 }
  0x13   :  { %204 = vmatprep.mubr.bf16.mxu0 %v1327_v2 }
  0x14   :  { %9 = vsyncpa [#allocation3], 0  ;;  %324 = vmatprep.mubr.bf16.mxu1 %v1327_v2  ;;  %v47_v22 = vld [vmem:[%s2108_s0 + $0xe0] sm:$0xff]  ;;  %v48_v23 = vld [vmem:[%s2108_s0 + $0xe8] sm:$0xff]  ;;  %1108 = vmatpush3.bf16.msra.mxu1 %v1168_v17  ;;  %v53_v24 = vpack.c.bf16 %v24_v20, %v23_v19  ;;  %v73_v61 = vlaneseq }
  0x15   :  { %1109 = vmatprep.subr.bf16.mxu1 %v1169_v21  ;;  %v1170_v25 = vld [vmem:[%s2111_s3 + $0x18] sm:$0xff]   ;;  %v65_v26 = vpack.c.bf16 %v48_v23, %v47_v22  ;;  %v25_v27 = vld [vmem:[%s2108_s0 + $0x30] sm:$0xff]  ;;  %v27_v33 = vld [vmem:[%s2108_s0 + $0x40] sm:$0xff] }
  0x16   :  { %v26_v28 = vld [vmem:[%s2108_s0 + $0x38] sm:$0xff]  ;;  %v49_v29 = vld [vmem:[%s2108_s0 + $0xf0] sm:$0xff]  ;;  %v28_v34 = vld [vmem:[%s2108_s0 + $0x48] sm:$0xff]  ;;  %v1521_v62 = vshrl.u32 %v73_v61, 7 }
  0x17   :  { %v50_v30 = vld [vmem:[%s2108_s0 + $0xf8] sm:$0xff]  ;;  %v54_v31 = vpack.c.bf16 %v26_v28, %v25_v27  ;;  %v55_v35 = vpack.c.bf16 %v28_v34, %v27_v33  ;;  %v29_v36 = vld [vmem:[%s2108_s0 + $0x50] sm:$0xff]  ;;  %v31_v39 = vld [vmem:[%s2108_s0 + $0x60] sm:$0xff] }
  0x18   :  { %1110 = vmatpush3.bf16.msra.mxu1 %v1169_v21  ;;  %v66_v32 = vpack.c.bf16 %v50_v30, %v49_v29  ;;  %v30_v37 = vld [vmem:[%s2108_s0 + $0x58] sm:$0xff]  ;;  %v32_v40 = vld [vmem:[%s2108_s0 + $0x68] sm:$0xff]  ;;  %v33_v42 = vld [vmem:[%s2108_s0 + $0x70] sm:$0xff]  ;;  %v79_v63 = vsub.s32 1, %v1521_v62 }
  0x19   :  { %1111 = vmatprep.subr.bf16.mxu1 %v1170_v25  ;;  %v56_v38 = vpack.c.bf16 %v30_v37, %v29_v36  ;;  %v57_v41 = vpack.c.bf16 %v32_v40, %v31_v39  ;;  %v34_v43 = vld [vmem:[%s2108_s0 + $0x78] sm:$0xff]  ;;  %v35_v45 = vld [vmem:[%s2108_s0 + $0x80] sm:$0xff]  ;;  %v36_v46 = vld [vmem:[%s2108_s0 + $0x88] sm:$0xff] }
  0x1a   :  { %1059 = vmatmul.mubr.msk.bf16.gmra.mrb[8].mxu0 %vm103_vm0, %v53_v24  ;;  %1071 = vmatmul.mubr.msk.bf16.gmra.mrb[8].mxu1 %vm103_vm0, %v65_v26  ;;  %v58_v44 = vpack.c.bf16 %v34_v43, %v33_v42  ;;  %v59_v47 = vpack.c.bf16 %v36_v46, %v35_v45  ;;  %v37_v48 = vld [vmem:[%s2108_s0 + $0x90] sm:$0xff]  ;;  %v38_v49 = vld [vmem:[%s2108_s0 + $0x98] sm:$0xff]  ;;  %v39_v51 = vld [vmem:[%s2108_s0 + $0xa0] sm:$0xff] }
  0x1b   :  { %214 = vmatprep.mubr.bf16.mxu0 %v1327_v2  ;;  %334 = vmatprep.mubr.bf16.mxu1 %v1327_v2  ;;  %v60_v50 = vpack.c.bf16 %v38_v49, %v37_v48  ;;  %v40_v52 = vld [vmem:[%s2108_s0 + $0xa8] sm:$0xff]  ;;  %v41_v54 = vld [vmem:[%s2108_s0 + $0xb0] sm:$0xff]  ;;  %v42_v55 = vld [vmem:[%s2108_s0 + $0xb8] sm:$0xff] }
  0x1c   :  { %1112 = vmatpush3.bf16.msra.mxu1 %v1170_v25  ;;  %v61_v53 = vpack.c.bf16 %v40_v52, %v39_v51  ;;  %v1171_v56 = vld [vmem:[%s2111_s3 + $0x20] sm:$0xff]   ;;  %v62_v57 = vpack.c.bf16 %v42_v55, %v41_v54  ;;  %v1172_v58 = vld [vmem:[%s2111_s3 + $0x28] sm:$0xff]   ;;  %v1173_v59 = vld [vmem:[%s2111_s3 + $0x30] sm:$0xff]  }
  0x1d   :  { %1113 = vmatprep.subr.bf16.mxu1 %v1171_v56  ;;  %v1174_v60 = vld [vmem:[%s2111_s3 + $0x38] sm:$0xff]   ;;  %v1527_v0 = vld [vmem:[%s2110_s2] sm:$0x3]  ;;  %s1328_s2 = smov [#allocation2]  }
  0x1e   :  { %v1530_v1 = vrot.slane %v1527_v0, %v79_v63  ;;  %s1042_s3 = sshll.u32 %s1328_s2, 4  ;;  %s1043_s3 = int_to_ptr.vmem [resolvable:$true] %s1042_s3 }
  0x1f   :  { %s1303_s23 = scalar_lea.vmem %s1043_s3, 4096  ;;  %p1308_p1 = scmp.lt.s32.totalorder %s1043_s3, %s1043_s3 }
  0x20   :  { %1114 = vmatpush3.bf16.msra.mxu1 %v1171_v56  ;;  %p1304_p0 = scmp.ne.s32.totalorder %s1043_s3, %s1303_s23  ;;  %p1309_p2 = scmp.lt.s32.totalorder %s1303_s23, %s1303_s23 }
  0x21   :  { %1115 = vmatprep.subr.bf16.mxu1 %v1172_v58 }
  0x22   :  { %1060 = vmatmul.mubr.msk.bf16.gmra.mrb[12].mxu0 %vm103_vm0, %v54_v31  ;;  %1072 = vmatmul.mubr.msk.bf16.gmra.mrb[12].mxu1 %vm103_vm0, %v66_v32  ;;  %p1310_p3 = por %p1309_p2, %p1308_p1 }
  0x23   :  { %224 = vmatprep.mubr.bf16.mxu0 %v1327_v2 }
  0x24   :  { %1116 = vmatpush3.bf16.msra.mxu1 %v1172_v58  ;;  %p1311_p4 = pnand %p1310_p3, %p1304_p0 }
  0x25   :  { %1117 = vmatprep.subr.bf16.mxu1 %v1173_v59 }
  0x28   :  { %1118 = vmatpush3.bf16.msra.mxu1 %v1173_v59 }
  0x29   :  { %1119 = vmatprep.subr.bf16.mxu1 %v1174_v60 }
  0x2a   :  { %1061 = vmatmul.mubr.msk.bf16.gmra.mrb[16].mxu0 %vm103_vm0, %v55_v35 }
  0x2b   :  { %234 = vmatprep.mubr.bf16.mxu0 %v1327_v2 }
  0x2c   :  { %1120 = vmatpush3.bf16.msra.mxu1 %v1174_v60 }
  0x32   :  { %1062 = vmatmul.mubr.msk.bf16.gmra.mrb[20].mxu0 %vm103_vm0, %v56_v38 }
  0x33   :  { %244 = vmatprep.mubr.bf16.mxu0 %v1327_v2 }
  0x3a   :  { %1063 = vmatmul.mubr.msk.bf16.gmra.mrb[24].mxu0 %vm103_vm0, %v57_v41 }
  0x3b   :  { %254 = vmatprep.mubr.bf16.mxu0 %v1327_v2 }
  0x42   :  { %1064 = vmatmul.mubr.msk.bf16.gmra.mrb[28].mxu0 %vm103_vm0, %v58_v44 }
  0x43   :  { %264 = vmatprep.mubr.bf16.mxu0 %v1327_v2 }
  0x4a   :  { %1065 = vmatmul.mubr.msk.bf16.gmra.mrb[32].mxu0 %vm103_vm0, %v59_v47 }
  0x4b   :  { %274 = vmatprep.mubr.bf16.mxu0 %v1327_v2 }
  0x52   :  { %1066 = vmatmul.mubr.msk.bf16.gmra.mrb[36].mxu0 %vm103_vm0, %v60_v50 }
  0x53   :  { %284 = vmatprep.mubr.bf16.mxu0 %v1327_v2 }
  0x5a   :  { %1067 = vmatmul.mubr.msk.bf16.gmra.mrb[40].mxu0 %vm103_vm0, %v61_v53 }
  0x5b   :  { %294 = vmatprep.mubr.bf16.mxu0 %v1327_v2 }
  0x62   :  { %1068 = vmatmul.mubr.msk.bf16.gmra.mrb[44].mxu0 %vm103_vm0, %v62_v57 }
  0xdd   :  { %v1532_v2 = vpop.f32.mrb[0].mxu0  ;;  %v1537_v6 = vpop.f32.mrb[0].mxu1 }
  0xde   :  { %v188_v3 = vpop.f32.mrb[1].mxu0  ;;  %v308_v8 = vpop.f32.mrb[1].mxu1 }
  0xdf   :  { %v189_v4 = vadd.f32 %v188_v3, %v1530_v1  ;;  %v1535_v5 = vpop.f32.mrb[2].mxu0  ;;  %v309_v10 = vadd.f32 %v308_v8, %v1530_v1  ;;  %v1541_v11 = vpop.f32.mrb[2].mxu1 }
  0xe0   :  { %v192_v7 = vpop.f32.mrb[3].mxu0  ;;  %v312_v12 = vpop.f32.mrb[3].mxu1 }
  0xe1   :  { %v193_v9 = vadd.f32 %v192_v7, %v1530_v1  ;;  %v345_v13 = vmax.f32 %v189_v4, 0.0  ;;  %v369_v15 = vmax.f32 %v309_v10, 0.0  ;;  %v313_v16 = vadd.f32 %v312_v12, %v1530_v1 }
  0xe3   :  { %v346_v14 = vmax.f32 %v193_v9, 0.0  ;;  %v370_v19 = vmax.f32 %v313_v16, 0.0 }
  0xe5   :  { %v377_v17 = vpack.c.bf16 %v346_v14, %v345_v13  ;;  %v1544_v18 = vpop.f32.mrb[4].mxu0  ;;  %v1549_v23 = vpack.c.bf16 %v370_v19, %v369_v15  ;;  %v1551_v24 = vpop.f32.mrb[4].mxu1 }
  0xe6   :  { %v198_v20 = vpop.f32.mrb[5].mxu0  ;;  %v318_v26 = vpop.f32.mrb[5].mxu1 }
  0xe7   :  { %v199_v21 = vadd.f32 %v198_v20, %v1530_v1  ;;  %v1547_v22 = vpop.f32.mrb[6].mxu0  ;;  %1121 = vmatprep.mubr.bf16.mxu1 %v377_v17  ;;  %v319_v28 = vadd.f32 %v318_v26, %v1530_v1  ;;  %v1555_v29 = vpop.f32.mrb[6].mxu1 }
  0xe8   :  { %v202_v25 = vpop.f32.mrb[7].mxu0  ;;  %v322_v30 = vpop.f32.mrb[7].mxu1 }
  0xe9   :  { %v203_v27 = vadd.f32 %v202_v25, %v1530_v1  ;;  %v347_v31 = vmax.f32 %v199_v21, 0.0  ;;  %v371_v33 = vmax.f32 %v319_v28, 0.0  ;;  %v323_v34 = vadd.f32 %v322_v30, %v1530_v1 }
  0xeb   :  { %v348_v32 = vmax.f32 %v203_v27, 0.0  ;;  %v372_v37 = vmax.f32 %v323_v34, 0.0 }
  0xed   :  { %v378_v35 = vpack.c.bf16 %v348_v32, %v347_v31  ;;  %v1558_v36 = vpop.f32.mrb[8].mxu0  ;;  %v1563_v41 = vpack.c.bf16 %v372_v37, %v371_v33  ;;  %v1565_v42 = vpop.f32.mrb[8].mxu1 }
  0xee   :  { %v208_v38 = vpop.f32.mrb[9].mxu0  ;;  %v328_v44 = vpop.f32.mrb[9].mxu1 }
  0xef   :  { %v209_v39 = vadd.f32 %v208_v38, %v1530_v1  ;;  %v1561_v40 = vpop.f32.mrb[10].mxu0  ;;  %1122 = vmatmul.mubr.bf16.vlgmr.msra.gmra.mrb[16].mxu1 %v378_v35  ;;  %v329_v46 = vadd.f32 %v328_v44, %v1530_v1  ;;  %v1569_v47 = vpop.f32.mrb[10].mxu1 }
  0xf0   :  { %v212_v43 = vpop.f32.mrb[11].mxu0  ;;  %v332_v48 = vpop.f32.mrb[11].mxu1 }
  0xf1   :  { %v213_v45 = vadd.f32 %v212_v43, %v1530_v1  ;;  %v349_v49 = vmax.f32 %v209_v39, 0.0  ;;  %v373_v51 = vmax.f32 %v329_v46, 0.0  ;;  %v333_v52 = vadd.f32 %v332_v48, %v1530_v1 }
  0xf3   :  { %v350_v50 = vmax.f32 %v213_v45, 0.0  ;;  %v374_v55 = vmax.f32 %v333_v52, 0.0 }
  0xf5   :  { %v379_v53 = vpack.c.bf16 %v350_v50, %v349_v49  ;;  %v1572_v54 = vpop.f32.mrb[12].mxu0  ;;  %v1577_v59 = vpack.c.bf16 %v374_v55, %v373_v51  ;;  %v1579_v60 = vpop.f32.mrb[12].mxu1 }
  0xf6   :  { %v218_v56 = vpop.f32.mrb[13].mxu0  ;;  %v338_v3 = vpop.f32.mrb[13].mxu1 }
  0xf7   :  { %v219_v57 = vadd.f32 %v218_v56, %v1530_v1  ;;  %v1575_v58 = vpop.f32.mrb[14].mxu0  ;;  %1125 = vmatprep.mubr.bf16.mxu1 %v379_v53  ;;  %v339_v7 = vadd.f32 %v338_v3, %v1530_v1  ;;  %v1583_v8 = vpop.f32.mrb[14].mxu1 }
  0xf8   :  { %v222_v63 = vpop.f32.mrb[15].mxu0  ;;  %v342_v9 = vpop.f32.mrb[15].mxu1 }
  0xf9   :  { %v223_v4 = vadd.f32 %v222_v63, %v1530_v1  ;;  %v351_v10 = vmax.f32 %v219_v57, 0.0  ;;  %v375_v13 = vmax.f32 %v339_v7, 0.0  ;;  %v343_v14 = vadd.f32 %v342_v9, %v1530_v1 }
  0xfb   :  { %v352_v12 = vmax.f32 %v223_v4, 0.0  ;;  %v376_v17 = vmax.f32 %v343_v14, 0.0 }
  0xfd   :  { %v380_v15 = vpack.c.bf16 %v352_v12, %v351_v10  ;;  %v1586_v16 = vpop.f32.mrb[16].mxu0  ;;  %v1591_v25 = vpack.c.bf16 %v376_v17, %v375_v13 }
  0xfe   :  { %v228_v19 = vpop.f32.mrb[17].mxu0 }
  0xff   :  { %v229_v20 = vadd.f32 %v228_v19, %v1530_v1  ;;  %v1589_v21 = vpop.f32.mrb[18].mxu0  ;;  %1126 = vmatmul.mubr.bf16.gmra.mrb[20].mxu1 %v380_v15 }
 0x100   :  { %v232_v26 = vpop.f32.mrb[19].mxu0 }
 0x101   :  { %v233_v27 = vadd.f32 %v232_v26, %v1530_v1  ;;  %v353_v28 = vmax.f32 %v229_v20, 0.0 }
 0x103   :  { %v354_v30 = vmax.f32 %v233_v27, 0.0 }
 0x105   :  { %v381_v31 = vpack.c.bf16 %v354_v30, %v353_v28  ;;  %v1594_v32 = vpop.f32.mrb[20].mxu0 }
 0x106   :  { %v238_v33 = vpop.f32.mrb[21].mxu0 }
 0x107   :  { %v239_v34 = vadd.f32 %v238_v33, %v1530_v1  ;;  %v1597_v35 = vpop.f32.mrb[22].mxu0  ;;  %1129 = vmatprep.mubr.bf16.mxu1 %v381_v31 }
 0x108   :  { %v242_v37 = vpop.f32.mrb[23].mxu0 }
 0x109   :  { %v243_v38 = vadd.f32 %v242_v37, %v1530_v1  ;;  %v355_v39 = vmax.f32 %v239_v34, 0.0 }
 0x10b   :  { %v356_v43 = vmax.f32 %v243_v38, 0.0 }
 0x10d   :  { %v382_v44 = vpack.c.bf16 %v356_v43, %v355_v39  ;;  %v1600_v45 = vpop.f32.mrb[24].mxu0 }
 0x10e   :  { %v248_v46 = vpop.f32.mrb[25].mxu0 }
 0x10f   :  { %v249_v48 = vadd.f32 %v248_v46, %v1530_v1  ;;  %v1603_v49 = vpop.f32.mrb[26].mxu0  ;;  %1130 = vmatmul.mubr.bf16.gmra.mrb[24].mxu1 %v382_v44 }
 0x110   :  { %v252_v50 = vpop.f32.mrb[27].mxu0 }
 0x111   :  { %v253_v51 = vadd.f32 %v252_v50, %v1530_v1  ;;  %v357_v52 = vmax.f32 %v249_v48, 0.0 }
 0x113   :  { %v358_v53 = vmax.f32 %v253_v51, 0.0 }
 0x115   :  { %v383_v55 = vpack.c.bf16 %v358_v53, %v357_v52  ;;  %v1606_v56 = vpop.f32.mrb[28].mxu0 }
 0x116   :  { %v258_v57 = vpop.f32.mrb[29].mxu0 }
 0x117   :  { %v259_v63 = vadd.f32 %v258_v57, %v1530_v1  ;;  %v1609_v3 = vpop.f32.mrb[30].mxu0  ;;  %1133 = vmatprep.mubr.bf16.mxu1 %v383_v55 }
 0x118   :  { %v262_v4 = vpop.f32.mrb[31].mxu0 }
 0x119   :  { %v263_v7 = vadd.f32 %v262_v4, %v1530_v1  ;;  %v359_v9 = vmax.f32 %v259_v63, 0.0 }
 0x11b   :  { %v360_v10 = vmax.f32 %v263_v7, 0.0 }
 0x11d   :  { %v384_v12 = vpack.c.bf16 %v360_v10, %v359_v9  ;;  %v1612_v13 = vpop.f32.mrb[32].mxu0 }
 0x11e   :  { %v268_v14 = vpop.f32.mrb[33].mxu0 }
 0x11f   :  { %v269_v15 = vadd.f32 %v268_v14, %v1530_v1  ;;  %v1615_v17 = vpop.f32.mrb[34].mxu0  ;;  %1134 = vmatmul.mubr.bf16.gmra.mrb[28].mxu1 %v384_v12 }
 0x120   :  { %v272_v19 = vpop.f32.mrb[35].mxu0 }
 0x121   :  { %v273_v20 = vadd.f32 %v272_v19, %v1530_v1  ;;  %v361_v26 = vmax.f32 %v269_v15, 0.0 }
 0x123   :  { %v362_v27 = vmax.f32 %v273_v20, 0.0 }
 0x125   :  { %v385_v28 = vpack.c.bf16 %v362_v27, %v361_v26  ;;  %v1618_v30 = vpop.f32.mrb[36].mxu0  ;;  %v75_v26 = vsub.s32 0, %v1521_v62 }
 0x126   :  { %v278_v31 = vpop.f32.mrb[37].mxu0 }
 0x127   :  { %v279_v33 = vadd.f32 %v278_v31, %v1530_v1  ;;  %v1621_v34 = vpop.f32.mrb[38].mxu0  ;;  %1137 = vmatprep.mubr.bf16.mxu1 %v385_v28  ;;  %v1642_v27 = vrot.slane %v1527_v0, %v75_v26  ;;  %v1645_v28 = vand.u32 127, %v73_v61 }
 0x128   :  { %v282_v37 = vpop.f32.mrb[39].mxu0 }
 0x129   :  { %v283_v38 = vadd.f32 %v282_v37, %v1530_v1  ;;  %v363_v39 = vmax.f32 %v279_v33, 0.0  ;;  %vm652_vm1 = vcmp.lt.s32.totalorder %v1645_v28, 8  ;;  %v191_v0 = vadd.f32 %v1535_v5, %v1642_v27 }
 0x12b   :  { %v364_v43 = vmax.f32 %v283_v38, 0.0 }
 0x12d   :  { %v386_v44 = vpack.c.bf16 %v364_v43, %v363_v39  ;;  %v1624_v46 = vpop.f32.mrb[40].mxu0  ;;  %v217_v39 = vadd.f32 %v1572_v54, %v1642_v27  ;;  %v207_v43 = vadd.f32 %v1558_v36, %v1642_v27 }
 0x12e   :  { %v288_v48 = vpop.f32.mrb[41].mxu0 }
 0x12f   :  { %v289_v50 = vadd.f32 %v288_v48, %v1530_v1  ;;  %v1627_v51 = vpop.f32.mrb[42].mxu0  ;;  %1138 = vmatmul.mubr.bf16.gmra.mrb[32].mxu1 %v386_v44  ;;  %v221_v48 = vadd.f32 %v1575_v58, %v1642_v27 }
 0x130   :  { %v292_v52 = vpop.f32.mrb[43].mxu0 }
 0x131   :  { %v293_v53 = vadd.f32 %v292_v52, %v1530_v1  ;;  %v365_v55 = vmax.f32 %v289_v50, 0.0 }
 0x133   :  { %v366_v57 = vmax.f32 %v293_v53, 0.0  ;;  %v211_v53 = vadd.f32 %v1561_v40, %v1642_v27 }
 0x135   :  { %v387_v63 = vpack.c.bf16 %v366_v57, %v365_v55  ;;  %v1630_v4 = vpop.f32.mrb[44].mxu0 }
 0x136   :  { %v298_v7 = vpop.f32.mrb[45].mxu0 }
 0x137   :  { %v299_v9 = vadd.f32 %v298_v7, %v1530_v1  ;;  %v1633_v10 = vpop.f32.mrb[46].mxu0  ;;  %1141 = vmatprep.mubr.bf16.mxu1 %v387_v63 }
 0x138   :  { %v302_v12 = vpop.f32.mrb[47].mxu0 }
 0x139   :  { %v303_v14 = vadd.f32 %v302_v12, %v1530_v1  ;;  %v367_v15 = vmax.f32 %v299_v9, 0.0  ;;  %v197_v1 = vadd.f32 %v1544_v18, %v1642_v27  ;;  %v237_v12 = vadd.f32 %v1594_v32, %v1642_v27 }
 0x13b   :  { %v368_v19 = vmax.f32 %v303_v14, 0.0  ;;  %v227_v14 = vadd.f32 %v1586_v16, %v1642_v27 }
 0x13d   :  { %v388_v20 = vpack.c.bf16 %v368_v19, %v367_v15  ;;  %v241_v19 = vadd.f32 %v1597_v35, %v1642_v27 }
 0x13f   :  { %1142 = vmatmul.mubr.bf16.gmra.mrb[36].mxu1 %v388_v20 }
 0x140   :  { %1145 = vmatprep.mubr.bf16.mxu1 %v1549_v23  ;;  %v187_v23 = vadd.f32 %v1532_v2, %v1642_v27 }
 0x147   :  { %1146 = vmatmul.mubr.bf16.gmra.mrb[40].mxu1 %v1563_v41 }
 0x148   :  { %1149 = vmatprep.mubr.bf16.mxu1 %v1577_v59  ;;  %v201_v59 = vadd.f32 %v1547_v22, %v1642_v27 }
 0x14f   :  { %1150 = vmatmul.mubr.bf16.gmra.mrb[44].mxu1 %v1591_v25 }
 0x1c2   :  { %v1123_v41 = vpop.f32.mrb[16].mxu1 }
 0x1c3   :  { %v620_v25 = vadd.f32 %v1123_v41, %v197_v1  ;;  %v491_v62 = vpop.f32.mrb[17].mxu1  ;;  %v231_v1 = vadd.f32 %v1589_v21, %v1642_v27 }
 0x1c4   :  { %v618_v31 = vadd.f32 %v491_v62, %v187_v23  ;;  %v1124_v61 = vpop.f32.mrb[18].mxu1 }
 0x1c5   :  { %v621_v33 = vadd.f32 %v1124_v61, %v201_v59  ;;  %v494_v37 = vpop.f32.mrb[19].mxu1  ;;  %v1658_v18 = vsel %vm652_vm1, %v620_v25, -1e+30 }
 0x1c6   :  { %v619_v2 = vadd.f32 %v494_v37, %v191_v0  ;;  %689 = vmax.xlane.f32.xlu1 %v1658_v18  ;;  %v1663_v38 = vsel %vm652_vm1, %v618_v31, -1e+30  ;;  %v257_v0 = vadd.f32 %v1606_v56, %v1642_v27  ;;  %v247_v31 = vadd.f32 %v1600_v45, %v1642_v27 }
 0x1c7   :  { %685 = vmax.xlane.f32.xlu0 %v1663_v38  ;;  %v1668_v5 = vsel %vm652_vm1, %v621_v33, -1e+30  ;;  %v261_v33 = vadd.f32 %v1609_v3, %v1642_v27 }
 0x1c8   :  { %v1673_v22 = vsel %vm652_vm1, %v619_v2, -1e+30 }
 0x1ca   :  { %691 = vmax.xlane.f32.xlu1 %v1668_v5 }
 0x1cb   :  { %687 = vmax.xlane.f32.xlu0 %v1673_v22 }
 0x1d2   :  { %v1127_v44 = vpop.f32.mrb[20].mxu1 }
 0x1d3   :  { %v624_v50 = vadd.f32 %v1127_v44, %v217_v39  ;;  %v507_v52 = vpop.f32.mrb[21].mxu1  ;;  %v251_v39 = vadd.f32 %v1603_v49, %v1642_v27 }
 0x1d4   :  { %v622_v55 = vadd.f32 %v507_v52, %v207_v43  ;;  %v1128_v57 = vpop.f32.mrb[22].mxu1 }
 0x1d5   :  { %v625_v63 = vadd.f32 %v1128_v57, %v221_v48  ;;  %v510_v7 = vpop.f32.mrb[23].mxu1  ;;  %v1686_v9 = vsel %vm652_vm1, %v624_v50, -1e+30 }
 0x1d6   :  { %v623_v54 = vadd.f32 %v510_v7, %v211_v53  ;;  %697 = vmax.xlane.f32.xlu0 %v1686_v9  ;;  %v1696_v40 = vsel %vm652_vm1, %v622_v55, -1e+30  ;;  %v277_v53 = vadd.f32 %v1618_v30, %v1642_v27  ;;  %v267_v55 = vadd.f32 %v1612_v13, %v1642_v27 }
 0x1d7   :  { %v1691_v36 = vsel %vm652_vm1, %v625_v63, -1e+30  ;;  %v281_v63 = vadd.f32 %v1621_v34, %v1642_v27 }
 0x1d8   :  { %699 = vmax.xlane.f32.xlu1 %v1691_v36  ;;  %v1701_v58 = vsel %vm652_vm1, %v623_v54, -1e+30 }
 0x1da   :  { %693 = vmax.xlane.f32.xlu0 %v1696_v40 }
 0x1dc   :  { %695 = vmax.xlane.f32.xlu1 %v1701_v58 }
 0x1e2   :  { %v1131_v15 = vpop.f32.mrb[24].mxu1 }
 0x1e3   :  { %v628_v20 = vadd.f32 %v1131_v15, %v237_v12  ;;  %v523_v26 = vpop.f32.mrb[25].mxu1  ;;  %v271_v12 = vadd.f32 %v1615_v17, %v1642_v27 }
 0x1e4   :  { %v626_v23 = vadd.f32 %v523_v26, %v227_v14  ;;  %v1132_v41 = vpop.f32.mrb[26].mxu1 }
 0x1e5   :  { %v629_v59 = vadd.f32 %v1132_v41, %v241_v19  ;;  %v526_v25 = vpop.f32.mrb[27].mxu1  ;;  %v1714_v62 = vsel %vm652_vm1, %v628_v20, -1e+30 }
 0x1e6   :  { %v627_v32 = vadd.f32 %v526_v25, %v231_v1  ;;  %705 = vmax.xlane.f32.xlu0 %v1714_v62  ;;  %v1724_v21 = vsel %vm652_vm1, %v626_v23, -1e+30  ;;  %v297_v1 = vadd.f32 %v1630_v4, %v1642_v27  ;;  %v287_v23 = vadd.f32 %v1624_v46, %v1642_v27 }
 0x1e7   :  { %v1719_v16 = vsel %vm652_vm1, %v629_v59, -1e+30  ;;  %v301_v59 = vadd.f32 %v1633_v10, %v1642_v27 }
 0x1e8   :  { %707 = vmax.xlane.f32.xlu1 %v1719_v16  ;;  %v1729_v35 = vsel %vm652_vm1, %v627_v32, -1e+30 }
 0x1ea   :  { %701 = vmax.xlane.f32.xlu0 %v1724_v21 }
 0x1ec   :  { %703 = vmax.xlane.f32.xlu1 %v1729_v35 }
 0x1f2   :  { %v1135_v61 = vpop.f32.mrb[28].mxu1 }
 0x1f3   :  { %v632_v37 = vadd.f32 %v1135_v61, %v257_v0  ;;  %v539_v2 = vpop.f32.mrb[29].mxu1  ;;  %v291_v0 = vadd.f32 %v1627_v51, %v1642_v27  ;;  %v317_v51 = vadd.f32 %v1551_v24, %v1642_v27  ;;  %v311_v24 = vadd.f32 %v1541_v11, %v1642_v27 }
 0x1f4   :  { %v630_v43 = vadd.f32 %v539_v2, %v247_v31  ;;  %v1136_v44 = vpop.f32.mrb[30].mxu1  ;;  %v337_v11 = vadd.f32 %v1579_v60, %v1642_v27  ;;  %v331_v60 = vadd.f32 %v1569_v47, %v1642_v27 }
 0x1f5   :  { %v633_v48 = vadd.f32 %v1136_v44, %v261_v33  ;;  %v542_v50 = vpop.f32.mrb[31].mxu1  ;;  %v1742_v52 = vsel %vm652_vm1, %v632_v37, -1e+30  ;;  %v321_v44 = vadd.f32 %v1555_v29, %v1642_v27 }
 0x1f6   :  { %v631_v56 = vadd.f32 %v542_v50, %v251_v39  ;;  %713 = vmax.xlane.f32.xlu0 %v1742_v52  ;;  %v1752_v49 = vsel %vm652_vm1, %v630_v43, -1e+30  ;;  %v307_v39 = vadd.f32 %v1537_v6, %v1642_v27 }
 0x1f7   :  { %v1747_v45 = vsel %vm652_vm1, %v633_v48, -1e+30 }
 0x1f8   :  { %715 = vmax.xlane.f32.xlu1 %v1747_v45  ;;  %v1757_v3 = vsel %vm652_vm1, %v631_v56, -1e+30 }
 0x1fa   :  { %709 = vmax.xlane.f32.xlu0 %v1752_v49 }
 0x1fc   :  { %711 = vmax.xlane.f32.xlu1 %v1757_v3 }
 0x202   :  { %v1139_v57 = vpop.f32.mrb[32].mxu1 }
 0x203   :  { %v636_v7 = vadd.f32 %v1139_v57, %v277_v53  ;;  %v555_v54 = vpop.f32.mrb[33].mxu1 }
 0x204   :  { %v634_v14 = vadd.f32 %v555_v54, %v267_v55  ;;  %v1140_v15 = vpop.f32.mrb[34].mxu1 }
 0x205   :  { %v637_v19 = vadd.f32 %v1140_v15, %v281_v63  ;;  %v558_v20 = vpop.f32.mrb[35].mxu1  ;;  %v1770_v26 = vsel %vm652_vm1, %v636_v7, -1e+30  ;;  %v341_v15 = vadd.f32 %v1583_v8, %v1642_v27 }
 0x206   :  { %v635_v30 = vadd.f32 %v558_v20, %v271_v12  ;;  %721 = vmax.xlane.f32.xlu0 %v1770_v26  ;;  %v1780_v17 = vsel %vm652_vm1, %v634_v14, -1e+30  ;;  %v327_v12 = vadd.f32 %v1565_v42, %v1642_v27 }
 0x207   :  { %v1775_v13 = vsel %vm652_vm1, %v637_v19, -1e+30 }
 0x208   :  { %723 = vmax.xlane.f32.xlu1 %v1775_v13  ;;  %v1785_v34 = vsel %vm652_vm1, %v635_v30, -1e+30 }
 0x20a   :  { %717 = vmax.xlane.f32.xlu0 %v1780_v17 }
 0x20c   :  { %719 = vmax.xlane.f32.xlu1 %v1785_v34 }
 0x212   :  { %v1143_v41 = vpop.f32.mrb[36].mxu1 }
 0x213   :  { %v640_v25 = vadd.f32 %v1143_v41, %v297_v1  ;;  %v571_v32 = vpop.f32.mrb[37].mxu1 }
 0x214   :  { %v638_v31 = vadd.f32 %v571_v32, %v287_v23  ;;  %v1144_v61 = vpop.f32.mrb[38].mxu1 }
 0x215   :  { %v641_v33 = vadd.f32 %v1144_v61, %v301_v59  ;;  %v574_v37 = vpop.f32.mrb[39].mxu1  ;;  %v1798_v2 = vsel %vm652_vm1, %v640_v25, -1e+30 }
 0x216   :  { %v639_v4 = vadd.f32 %v574_v37, %v291_v0  ;;  %729 = vmax.xlane.f32.xlu0 %v1798_v2  ;;  %v1810_v10 = vsel %vm652_vm1, %v638_v31, -1e+30 }
 0x217   :  { %v1803_v46 = vsel %vm652_vm1, %v641_v33, -1e+30 }
 0x218   :  { %731 = vmax.xlane.f32.xlu1 %v1803_v46  ;;  %v1819_v56 = vsel %vm652_vm1, %v639_v4, -1e+30 }
 0x21a   :  { %v1147_v43 = vpop.f32.mrb[40].mxu1  ;;  %725 = vmax.xlane.f32.xlu0 %v1810_v10 }
 0x21b   :  { %v644_v48 = vadd.f32 %v1147_v43, %v317_v51  ;;  %v587_v50 = vpop.f32.mrb[41].mxu1 }
 0x21c   :  { %v642_v53 = vadd.f32 %v587_v50, %v307_v39  ;;  %727 = vmax.xlane.f32.xlu1 %v1819_v56  ;;  %v1148_v55 = vpop.f32.mrb[42].mxu1 }
 0x21d   :  { %v645_v6 = vadd.f32 %v1148_v55, %v321_v44  ;;  %v590_v57 = vpop.f32.mrb[43].mxu1  ;;  %v1826_v63 = vsel %vm652_vm1, %v644_v48, -1e+30 }
 0x21e   :  { %v643_v29 = vadd.f32 %v590_v57, %v311_v24  ;;  %737 = vmax.xlane.f32.xlu0 %v1826_v63  ;;  %v1838_v54 = vsel %vm652_vm1, %v642_v53, -1e+30 }
 0x21f   :  { %v1831_v7 = vsel %vm652_vm1, %v645_v6, -1e+30 }
 0x220   :  { %739 = vmax.xlane.f32.xlu1 %v1831_v7  ;;  %v1847_v30 = vsel %vm652_vm1, %v643_v29, -1e+30 }
 0x222   :  { %v1151_v14 = vpop.f32.mrb[44].mxu1  ;;  %733 = vmax.xlane.f32.xlu0 %v1838_v54 }
 0x223   :  { %v648_v19 = vadd.f32 %v1151_v14, %v337_v11  ;;  %v603_v20 = vpop.f32.mrb[45].mxu1 }
 0x224   :  { %v646_v1 = vadd.f32 %v603_v20, %v327_v12  ;;  %735 = vmax.xlane.f32.xlu1 %v1847_v30  ;;  %v1152_v23 = vpop.f32.mrb[46].mxu1 }
 0x225   :  { %v649_v42 = vadd.f32 %v1152_v23, %v341_v15  ;;  %v606_v41 = vpop.f32.mrb[47].mxu1  ;;  %v1864_v47 = vsel %vm652_vm1, %v648_v19, -1e+30 }
 0x226   :  { %v647_v59 = vadd.f32 %v606_v41, %v331_v60  ;;  %v1854_v25 = vsel %vm652_vm1, %v646_v1, -1e+30 }
 0x227   :  { %741 = vmax.xlane.f32.xlu0 %v1854_v25  ;;  %v1869_v27 = vsel %vm652_vm1, %v649_v42, -1e+30 }
 0x228   :  { %v1859_v8 = vsel %vm652_vm1, %v647_v59, -1e+30 }
 0x229   :  { %743 = vmax.xlane.f32.xlu1 %v1859_v8 }
 0x22b   :  { %745 = vmax.xlane.f32.xlu0 %v1864_v47 }
 0x22d   :  { %747 = vmax.xlane.f32.xlu1 %v1869_v27 }
 0x253   :  { %v690_v32 = vpop.xlane.xlu1 %689 }
 0x254   :  { %v751_v0 = vsub.f32 %v1658_v18, %v690_v32  ;;  %v686_v31 = vpop.xlane.xlu0 %685 }
 0x255   :  { %v749_v61 = vsub.f32 %v1663_v38, %v686_v31 }
 0x256   :  { %v785_v33 = vmul.f32 1.442695, %v751_v0 }
 0x257   :  { %v781_v37 = vmul.f32 1.442695, %v749_v61  ;;  %v692_v4 = vpop.xlane.xlu1 %691 }
 0x258   :  { %1175 = vpow2.f32 %v785_v33  ;;  %v752_v51 = vsub.f32 %v1668_v5, %v692_v4  ;;  %v688_v39 = vpop.xlane.xlu0 %687 }
 0x259   :  { %v750_v43 = vsub.f32 %v1673_v22, %v688_v39  ;;  %1177 = vpow2.f32 %v781_v37 }
 0x25a   :  { %v787_v44 = vmul.f32 1.442695, %v752_v51 }
 0x25b   :  { %v783_v48 = vmul.f32 1.442695, %v750_v43 }
 0x25c   :  { %1179 = vpow2.f32 %v787_v44 }
 0x25d   :  { %1181 = vpow2.f32 %v783_v48 }
 0x262   :  { %v1176_v50 = vpop.eup %1175 }
 0x263   :  { %v698_v24 = vpop.xlane.xlu0 %697  ;;  %v1878_v18 = vsel %vm652_vm1, %v1176_v50, 0.0  ;;  %v1178_v38 = vpop.eup %1177 }
 0x264   :  { %v755_v53 = vsub.f32 %v1686_v9, %v698_v24  ;;  %881 = vadd.xlane.f32.xlu0 %v1878_v18  ;;  %v1889_v11 = vsel %vm652_vm1, %v1178_v38, 0.0 }
 0x265   :  { %v700_v5 = vpop.xlane.xlu1 %699 }
 0x266   :  { %v1180_v55 = vpop.eup %1179  ;;  %v793_v6 = vmul.f32 1.442695, %v755_v53  ;;  %v756_v22 = vsub.f32 %v1691_v36, %v700_v5 }
 0x267   :  { %v694_v57 = vpop.xlane.xlu0 %693  ;;  %v1885_v29 = vsel %vm652_vm1, %v1180_v55, 0.0  ;;  %v1182_v12 = vpop.eup %1181 }
 0x268   :  { %1183 = vpow2.f32 %v793_v6  ;;  %v795_v14 = vmul.f32 1.442695, %v756_v22  ;;  %v753_v9 = vsub.f32 %v1696_v40, %v694_v57  ;;  %883 = vadd.xlane.f32.xlu1 %v1885_v29  ;;  %877 = vadd.xlane.f32.xlu0 %v1889_v11  ;;  %v1897_v20 = vsel %vm652_vm1, %v1182_v12, 0.0 }
 0x269   :  { %v696_v15 = vpop.xlane.xlu1 %695 }
 0x26a   :  { %1185 = vpow2.f32 %v795_v14  ;;  %v789_v36 = vmul.f32 1.442695, %v753_v9  ;;  %v754_v19 = vsub.f32 %v1701_v58, %v696_v15 }
 0x26c   :  { %1187 = vpow2.f32 %v789_v36  ;;  %v791_v60 = vmul.f32 1.442695, %v754_v19  ;;  %879 = vadd.xlane.f32.xlu1 %v1897_v20 }
 0x26e   :  { %1189 = vpow2.f32 %v791_v60 }
 0x272   :  { %v1184_v1 = vpop.eup %1183 }
 0x273   :  { %v706_v40 = vpop.xlane.xlu0 %705  ;;  %v1902_v23 = vsel %vm652_vm1, %v1184_v1, 0.0 }
 0x274   :  { %v1186_v42 = vpop.eup %1185  ;;  %v759_v41 = vsub.f32 %v1714_v62, %v706_v40  ;;  %889 = vadd.xlane.f32.xlu0 %v1902_v23 }
 0x275   :  { %v708_v58 = vpop.xlane.xlu1 %707  ;;  %v1908_v59 = vsel %vm652_vm1, %v1186_v42, 0.0 }
 0x276   :  { %v1188_v32 = vpop.eup %1187  ;;  %v801_v0 = vmul.f32 1.442695, %v759_v41  ;;  %v760_v31 = vsub.f32 %v1719_v16, %v708_v58  ;;  %891 = vadd.xlane.f32.xlu1 %v1908_v59 }
 0x277   :  { %v702_v61 = vpop.xlane.xlu0 %701  ;;  %v1914_v33 = vsel %vm652_vm1, %v1188_v32, 0.0 }
 0x278   :  { %v1190_v37 = vpop.eup %1189  ;;  %1191 = vpow2.f32 %v801_v0  ;;  %v803_v62 = vmul.f32 1.442695, %v760_v31  ;;  %v757_v4 = vsub.f32 %v1724_v21, %v702_v61  ;;  %885 = vadd.xlane.f32.xlu0 %v1914_v33 }
 0x279   :  { %v704_v51 = vpop.xlane.xlu1 %703  ;;  %v1920_v39 = vsel %vm652_vm1, %v1190_v37, 0.0 }
 0x27a   :  { %1193 = vpow2.f32 %v803_v62  ;;  %v797_v16 = vmul.f32 1.442695, %v757_v4  ;;  %v758_v43 = vsub.f32 %v1729_v35, %v704_v51  ;;  %887 = vadd.xlane.f32.xlu1 %v1920_v39 }
 0x27c   :  { %1195 = vpow2.f32 %v797_v16  ;;  %v799_v44 = vmul.f32 1.442695, %v758_v43 }
 0x27e   :  { %1197 = vpow2.f32 %v799_v44 }
 0x282   :  { %v1192_v48 = vpop.eup %1191 }
 0x283   :  { %v714_v50 = vpop.xlane.xlu0 %713  ;;  %v1926_v21 = vsel %vm652_vm1, %v1192_v48, 0.0 }
 0x284   :  { %v1194_v24 = vpop.eup %1193  ;;  %v763_v38 = vsub.f32 %v1742_v52, %v714_v50  ;;  %897 = vadd.xlane.f32.xlu0 %v1926_v21 }
 0x285   :  { %v716_v53 = vpop.xlane.xlu1 %715  ;;  %v1932_v35 = vsel %vm652_vm1, %v1194_v24, 0.0 }
 0x286   :  { %v1196_v5 = vpop.eup %1195  ;;  %v809_v55 = vmul.f32 1.442695, %v763_v38  ;;  %v764_v6 = vsub.f32 %v1747_v45, %v716_v53  ;;  %899 = vadd.xlane.f32.xlu1 %v1932_v35 }
 0x287   :  { %v710_v22 = vpop.xlane.xlu0 %709  ;;  %v1938_v57 = vsel %vm652_vm1, %v1196_v5, 0.0 }
 0x288   :  { %v1198_v12 = vpop.eup %1197  ;;  %1199 = vpow2.f32 %v809_v55  ;;  %v811_v52 = vmul.f32 1.442695, %v764_v6  ;;  %v761_v14 = vsub.f32 %v1752_v49, %v710_v22  ;;  %893 = vadd.xlane.f32.xlu0 %v1938_v57 }
 0x289   :  { %v712_v9 = vpop.xlane.xlu1 %711  ;;  %v1944_v15 = vsel %vm652_vm1, %v1198_v12, 0.0 }
 0x28a   :  { %1201 = vpow2.f32 %v811_v52  ;;  %v805_v45 = vmul.f32 1.442695, %v761_v14  ;;  %v762_v36 = vsub.f32 %v1757_v3, %v712_v9  ;;  %895 = vadd.xlane.f32.xlu1 %v1944_v15 }
 0x28c   :  { %1203 = vpow2.f32 %v805_v45  ;;  %v807_v19 = vmul.f32 1.442695, %v762_v36 }
 0x28e   :  { %1205 = vpow2.f32 %v807_v19 }
 0x292   :  { %v1200_v60 = vpop.eup %1199 }
 0x293   :  { %v722_v1 = vpop.xlane.xlu0 %721  ;;  %v1950_v49 = vsel %vm652_vm1, %v1200_v60, 0.0 }
 0x294   :  { %v1202_v40 = vpop.eup %1201  ;;  %v767_v42 = vsub.f32 %v1770_v26, %v722_v1  ;;  %905 = vadd.xlane.f32.xlu0 %v1950_v49 }
 0x295   :  { %v724_v41 = vpop.xlane.xlu1 %723  ;;  %v1956_v3 = vsel %vm652_vm1, %v1202_v40, 0.0 }
 0x296   :  { %v1204_v58 = vpop.eup %1203  ;;  %v817_v32 = vmul.f32 1.442695, %v767_v42  ;;  %v768_v0 = vsub.f32 %v1775_v13, %v724_v41  ;;  %907 = vadd.xlane.f32.xlu1 %v1956_v3 }
 0x297   :  { %v718_v31 = vpop.xlane.xlu0 %717  ;;  %v1962_v61 = vsel %vm652_vm1, %v1204_v58, 0.0 }
 0x298   :  { %v1206_v37 = vpop.eup %1205  ;;  %1207 = vpow2.f32 %v817_v32  ;;  %v819_v26 = vmul.f32 1.442695, %v768_v0  ;;  %v765_v62 = vsub.f32 %v1780_v17, %v718_v31  ;;  %901 = vadd.xlane.f32.xlu0 %v1962_v61 }
 0x299   :  { %v720_v4 = vpop.xlane.xlu1 %719  ;;  %v1968_v51 = vsel %vm652_vm1, %v1206_v37, 0.0 }
 0x29a   :  { %1209 = vpow2.f32 %v819_v26  ;;  %v813_v13 = vmul.f32 1.442695, %v765_v62  ;;  %v766_v16 = vsub.f32 %v1785_v34, %v720_v4  ;;  %903 = vadd.xlane.f32.xlu1 %v1968_v51 }
 0x29c   :  { %1211 = vpow2.f32 %v813_v13  ;;  %v815_v43 = vmul.f32 1.442695, %v766_v16 }
 0x29e   :  { %1213 = vpow2.f32 %v815_v43 }
 0x2a2   :  { %v1208_v44 = vpop.eup %1207 }
 0x2a3   :  { %v730_v48 = vpop.xlane.xlu0 %729  ;;  %v1974_v17 = vsel %vm652_vm1, %v1208_v44, 0.0 }
 0x2a4   :  { %v1210_v50 = vpop.eup %1209  ;;  %v771_v24 = vsub.f32 %v1798_v2, %v730_v48  ;;  %913 = vadd.xlane.f32.xlu0 %v1974_v17 }
 0x2a5   :  { %v732_v38 = vpop.xlane.xlu1 %731  ;;  %v1980_v34 = vsel %vm652_vm1, %v1210_v50, 0.0 }
 0x2a6   :  { %v1212_v53 = vpop.eup %1211  ;;  %v825_v5 = vmul.f32 1.442695, %v771_v24  ;;  %v772_v55 = vsub.f32 %v1803_v46, %v732_v38  ;;  %915 = vadd.xlane.f32.xlu1 %v1980_v34 }
 0x2a7   :  { %v726_v6 = vpop.xlane.xlu0 %725  ;;  %v1986_v22 = vsel %vm652_vm1, %v1212_v53, 0.0 }
 0x2a8   :  { %v1214_v12 = vpop.eup %1213  ;;  %1215 = vpow2.f32 %v825_v5  ;;  %v827_v2 = vmul.f32 1.442695, %v772_v55  ;;  %v769_v52 = vsub.f32 %v1810_v10, %v726_v6  ;;  %909 = vadd.xlane.f32.xlu0 %v1986_v22 }
 0x2a9   :  { %v728_v14 = vpop.xlane.xlu1 %727  ;;  %v1992_v9 = vsel %vm652_vm1, %v1214_v12, 0.0 }
 0x2aa   :  { %1217 = vpow2.f32 %v827_v2  ;;  %v821_v46 = vmul.f32 1.442695, %v769_v52  ;;  %v770_v45 = vsub.f32 %v1819_v56, %v728_v14  ;;  %911 = vadd.xlane.f32.xlu1 %v1992_v9 }
 0x2ab   :  { %v738_v36 = vpop.xlane.xlu0 %737 }
 0x2ac   :  { %1219 = vpow2.f32 %v821_v46  ;;  %v823_v19 = vmul.f32 1.442695, %v770_v45  ;;  %v775_v60 = vsub.f32 %v1826_v63, %v738_v36 }
 0x2ad   :  { %v740_v1 = vpop.xlane.xlu1 %739 }
 0x2ae   :  { %1221 = vpow2.f32 %v823_v19  ;;  %v833_v10 = vmul.f32 1.442695, %v775_v60  ;;  %v776_v40 = vsub.f32 %v1831_v7, %v740_v1 }
 0x2af   :  { %v734_v42 = vpop.xlane.xlu0 %733 }
 0x2b0   :  { %1223 = vpow2.f32 %v833_v10  ;;  %v835_v41 = vmul.f32 1.442695, %v776_v40  ;;  %v773_v58 = vsub.f32 %v1838_v54, %v734_v42 }
 0x2b1   :  { %v736_v32 = vpop.xlane.xlu1 %735 }
 0x2b2   :  { %v1216_v0 = vpop.eup %1215  ;;  %1225 = vpow2.f32 %v835_v41  ;;  %v829_v56 = vmul.f32 1.442695, %v773_v58  ;;  %v774_v31 = vsub.f32 %v1847_v30, %v736_v32 }
 0x2b3   :  { %v2002_v37 = vsel %vm652_vm1, %v1216_v0, 0.0 }
 0x2b4   :  { %v1218_v63 = vpop.eup %1217  ;;  %1227 = vpow2.f32 %v829_v56  ;;  %v831_v26 = vmul.f32 1.442695, %v774_v31  ;;  %921 = vadd.xlane.f32.xlu0 %v2002_v37  ;;  %v742_v7 = vpop.xlane.xlu0 %741 }
 0x2b5   :  { %v777_v62 = vsub.f32 %v1854_v25, %v742_v7  ;;  %v2008_v54 = vsel %vm652_vm1, %v1218_v63, 0.0 }
 0x2b6   :  { %v1220_v4 = vpop.eup %1219  ;;  %1229 = vpow2.f32 %v831_v26  ;;  %v744_v13 = vpop.xlane.xlu1 %743  ;;  %923 = vadd.xlane.f32.xlu1 %v2008_v54 }
 0x2b7   :  { %v837_v30 = vmul.f32 1.442695, %v777_v62  ;;  %v778_v16 = vsub.f32 %v1859_v8, %v744_v13  ;;  %v2014_v43 = vsel %vm652_vm1, %v1220_v4, 0.0 }
 0x2b8   :  { %v1222_v44 = vpop.eup %1221  ;;  %917 = vadd.xlane.f32.xlu0 %v2014_v43  ;;  %v746_v25 = vpop.xlane.xlu0 %745 }
 0x2b9   :  { %1231 = vpow2.f32 %v837_v30  ;;  %v839_v48 = vmul.f32 1.442695, %v778_v16  ;;  %v779_v50 = vsub.f32 %v1864_v47, %v746_v25  ;;  %v2020_v24 = vsel %vm652_vm1, %v1222_v44, 0.0 }
 0x2ba   :  { %v1224_v38 = vpop.eup %1223  ;;  %v748_v53 = vpop.xlane.xlu1 %747  ;;  %919 = vadd.xlane.f32.xlu1 %v2020_v24 }
 0x2bb   :  { %1233 = vpow2.f32 %v839_v48  ;;  %v841_v8 = vmul.f32 1.442695, %v779_v50  ;;  %v780_v5 = vsub.f32 %v1869_v27, %v748_v53  ;;  %v2026_v55 = vsel %vm652_vm1, %v1224_v38, 0.0 }
 0x2bc   :  { %v1226_v6 = vpop.eup %1225  ;;  %929 = vadd.xlane.f32.xlu0 %v2026_v55 }
 0x2bd   :  { %1235 = vpow2.f32 %v841_v8  ;;  %v843_v47 = vmul.f32 1.442695, %v780_v5  ;;  %v2031_v12 = vsel %vm652_vm1, %v1226_v6, 0.0 }
 0x2be   :  { %v1228_v2 = vpop.eup %1227  ;;  %931 = vadd.xlane.f32.xlu1 %v2031_v12 }
 0x2bf   :  { %1237 = vpow2.f32 %v843_v47  ;;  %v2036_v27 = vsel %vm652_vm1, %v1228_v2, 0.0 }
 0x2c0   :  { %v1230_v52 = vpop.eup %1229  ;;  %925 = vadd.xlane.f32.xlu0 %v2036_v27 }
 0x2c1   :  { %v2041_v14 = vsel %vm652_vm1, %v1230_v52, 0.0 }
 0x2c2   :  { %927 = vadd.xlane.f32.xlu1 %v2041_v14 }
 0x2c3   :  { %v1232_v46 = vpop.eup %1231 }
 0x2c4   :  { %v2046_v45 = vsel %vm652_vm1, %v1232_v46, 0.0 }
 0x2c5   :  { %v1234_v36 = vpop.eup %1233  ;;  %933 = vadd.xlane.f32.xlu0 %v2046_v45 }
 0x2c6   :  { %v2051_v19 = vsel %vm652_vm1, %v1234_v36, 0.0 }
 0x2c7   :  { %v1236_v60 = vpop.eup %1235  ;;  %935 = vadd.xlane.f32.xlu1 %v2051_v19 }
 0x2c8   :  { %v2056_v1 = vsel %vm652_vm1, %v1236_v60, 0.0 }
 0x2c9   :  { %v1238_v10 = vpop.eup %1237  ;;  %937 = vadd.xlane.f32.xlu0 %v2056_v1 }
 0x2ca   :  { %v2061_v40 = vsel %vm652_vm1, %v1238_v10, 0.0 }
 0x2cb   :  { %939 = vadd.xlane.f32.xlu1 %v2061_v40 }
 0x2f1   :  { %v882_v42 = vpop.xlane.xlu0 %881 }
 0x2f2   :  { %1239 = vrcp.f32 %v882_v42 }
 0x2f5   :  { %v884_v41 = vpop.xlane.xlu1 %883  ;;  %v878_v58 = vpop.xlane.xlu0 %877 }
 0x2f6   :  { %1241 = vrcp.f32 %v884_v41 }
 0x2f7   :  { %1243 = vrcp.f32 %v878_v58 }
 0x2f9   :  { %v880_v32 = vpop.xlane.xlu1 %879 }
 0x2fa   :  { %1245 = vrcp.f32 %v880_v32 }
 0x2fc   :  { %v1240_v0 = vpop.eup %1239 }
 0x2fd   :  { %v946_v56 = vmul.f32 %v1240_v0, %v1878_v18 }
 0x2ff   :  { %1007 = vst [vmem:[#allocation2 + $0x10] sm:$0xff] %v946_v56 }
 0x300   :  { %v1242_v31 = vpop.eup %1241 }
 0x301   :  { %v1244_v63 = vpop.eup %1243  ;;  %v948_v28 = vmul.f32 %v1242_v31, %v1885_v29  ;;  %v890_v26 = vpop.xlane.xlu0 %889 }
 0x302   :  { %v942_v7 = vmul.f32 %v1244_v63, %v1889_v11  ;;  %1247 = vrcp.f32 %v890_v26 }
 0x303   :  { %1008 = vst [vmem:[#allocation2 + $0x18] sm:$0xff] %v948_v28  ;;  %v892_v62 = vpop.xlane.xlu1 %891 }
 0x304   :  { %v1246_v4 = vpop.eup %1245  ;;  %1005 = vst [vmem:[#allocation2] sm:$0xff] %v942_v7  ;;  %1249 = vrcp.f32 %v892_v62 }
 0x305   :  { %v944_v13 = vmul.f32 %v1246_v4, %v1897_v20  ;;  %v886_v30 = vpop.xlane.xlu0 %885 }
 0x306   :  { %1251 = vrcp.f32 %v886_v30 }
 0x307   :  { %1006 = vst [vmem:[#allocation2 + $0x8] sm:$0xff] %v944_v13  ;;  %v888_v18 = vpop.xlane.xlu1 %887 }
 0x308   :  { %1253 = vrcp.f32 %v888_v18 }
 0x30c   :  { %v1248_v16 = vpop.eup %1247 }
 0x30d   :  { %v954_v44 = vmul.f32 %v1248_v16, %v1902_v23 }
 0x30e   :  { %v1250_v29 = vpop.eup %1249 }
 0x30f   :  { %1011 = vst [vmem:[#allocation2 + $0x30] sm:$0xff] %v954_v44  ;;  %v956_v11 = vmul.f32 %v1250_v29, %v1908_v59 }
 0x310   :  { %v1252_v25 = vpop.eup %1251 }
 0x311   :  { %1012 = vst [vmem:[#allocation2 + $0x38] sm:$0xff] %v956_v11  ;;  %v950_v48 = vmul.f32 %v1252_v25, %v1914_v33  ;;  %v898_v50 = vpop.xlane.xlu0 %897 }
 0x312   :  { %v1254_v38 = vpop.eup %1253  ;;  %1255 = vrcp.f32 %v898_v50 }
 0x313   :  { %1009 = vst [vmem:[#allocation2 + $0x20] sm:$0xff] %v950_v48  ;;  %v952_v20 = vmul.f32 %v1254_v38, %v1920_v39  ;;  %v900_v53 = vpop.xlane.xlu1 %899 }
 0x314   :  { %1257 = vrcp.f32 %v900_v53 }
 0x315   :  { %1010 = vst [vmem:[#allocation2 + $0x28] sm:$0xff] %v952_v20  ;;  %v894_v8 = vpop.xlane.xlu0 %893 }
 0x316   :  { %1259 = vrcp.f32 %v894_v8 }
 0x317   :  { %v896_v23 = vpop.xlane.xlu1 %895 }
 0x318   :  { %1261 = vrcp.f32 %v896_v23 }
 0x31c   :  { %v1256_v5 = vpop.eup %1255 }
 0x31d   :  { %v962_v59 = vmul.f32 %v1256_v5, %v1926_v21 }
 0x31e   :  { %v1258_v6 = vpop.eup %1257 }
 0x31f   :  { %1015 = vst [vmem:[#allocation2 + $0x50] sm:$0xff] %v962_v59  ;;  %v964_v33 = vmul.f32 %v1258_v6, %v1932_v35 }
 0x320   :  { %v1260_v47 = vpop.eup %1259 }
 0x321   :  { %1016 = vst [vmem:[#allocation2 + $0x58] sm:$0xff] %v964_v33  ;;  %v958_v2 = vmul.f32 %v1260_v47, %v1938_v57  ;;  %v906_v52 = vpop.xlane.xlu0 %905 }
 0x322   :  { %v1262_v39 = vpop.eup %1261  ;;  %1263 = vrcp.f32 %v906_v52 }
 0x323   :  { %1013 = vst [vmem:[#allocation2 + $0x40] sm:$0xff] %v958_v2  ;;  %v960_v46 = vmul.f32 %v1262_v39, %v1944_v15  ;;  %v908_v36 = vpop.xlane.xlu1 %907 }
 0x324   :  { %1265 = vrcp.f32 %v908_v36 }
 0x325   :  { %1014 = vst [vmem:[#allocation2 + $0x48] sm:$0xff] %v960_v46  ;;  %v902_v60 = vpop.xlane.xlu0 %901 }
 0x326   :  { %1267 = vrcp.f32 %v902_v60 }
 0x327   :  { %v904_v21 = vpop.xlane.xlu1 %903 }
 0x328   :  { %1269 = vrcp.f32 %v904_v21 }
 0x32c   :  { %v1264_v10 = vpop.eup %1263 }
 0x32d   :  { %v970_v35 = vmul.f32 %v1264_v10, %v1950_v49 }
 0x32e   :  { %v1266_v42 = vpop.eup %1265 }
 0x32f   :  { %1019 = vst [vmem:[#allocation2 + $0x70] sm:$0xff] %v970_v35  ;;  %v972_v57 = vmul.f32 %v1266_v42, %v1956_v3 }
 0x330   :  { %v1268_v41 = vpop.eup %1267 }
 0x331   :  { %1020 = vst [vmem:[#allocation2 + $0x78] sm:$0xff] %v972_v57  ;;  %v966_v58 = vmul.f32 %v1268_v41, %v1962_v61  ;;  %v914_v32 = vpop.xlane.xlu0 %913 }
 0x332   :  { %v1270_v15 = vpop.eup %1269  ;;  %1271 = vrcp.f32 %v914_v32 }
 0x333   :  { %1017 = vst [vmem:[#allocation2 + $0x60] sm:$0xff] %v966_v58  ;;  %v968_v0 = vmul.f32 %v1270_v15, %v1968_v51  ;;  %v916_v56 = vpop.xlane.xlu1 %915 }
 0x334   :  { %1273 = vrcp.f32 %v916_v56 }
 0x335   :  { %1018 = vst [vmem:[#allocation2 + $0x68] sm:$0xff] %v968_v0  ;;  %v910_v31 = vpop.xlane.xlu0 %909 }
 0x336   :  { %1275 = vrcp.f32 %v910_v31 }
 0x337   :  { %v912_v49 = vpop.xlane.xlu1 %911 }
 0x338   :  { %1277 = vrcp.f32 %v912_v49 }
 0x33c   :  { %v1272_v63 = vpop.eup %1271 }
 0x33d   :  { %v978_v3 = vmul.f32 %v1272_v63, %v1974_v17 }
 0x33e   :  { %v1274_v28 = vpop.eup %1273 }
 0x33f   :  { %1023 = vst [vmem:[#allocation2 + $0x90] sm:$0xff] %v978_v3  ;;  %v980_v61 = vmul.f32 %v1274_v28, %v1980_v34 }
 0x340   :  { %v1276_v26 = vpop.eup %1275 }
 0x341   :  { %1024 = vst [vmem:[#allocation2 + $0x98] sm:$0xff] %v980_v61  ;;  %v974_v7 = vmul.f32 %v1276_v26, %v1986_v22  ;;  %v922_v62 = vpop.xlane.xlu0 %921 }
 0x342   :  { %v1278_v51 = vpop.eup %1277  ;;  %1279 = vrcp.f32 %v922_v62 }
 0x343   :  { %1021 = vst [vmem:[#allocation2 + $0x80] sm:$0xff] %v974_v7  ;;  %v976_v4 = vmul.f32 %v1278_v51, %v1992_v9  ;;  %v924_v13 = vpop.xlane.xlu1 %923 }
 0x344   :  { %1281 = vrcp.f32 %v924_v13 }
 0x345   :  { %1022 = vst [vmem:[#allocation2 + $0x88] sm:$0xff] %v976_v4  ;;  %v918_v30 = vpop.xlane.xlu0 %917 }
 0x346   :  { %1283 = vrcp.f32 %v918_v30 }
 0x347   :  { %v920_v17 = vpop.xlane.xlu1 %919 }
 0x348   :  { %1285 = vrcp.f32 %v920_v17 }
 0x349   :  { %v930_v18 = vpop.xlane.xlu0 %929 }
 0x34a   :  { %1287 = vrcp.f32 %v930_v18 }
 0x34b   :  { %v932_v34 = vpop.xlane.xlu1 %931 }
 0x34c   :  { %v1280_v16 = vpop.eup %1279  ;;  %1289 = vrcp.f32 %v932_v34 }
 0x34d   :  { %v986_v22 = vmul.f32 %v1280_v16, %v2002_v37  ;;  %v926_v44 = vpop.xlane.xlu0 %925 }
 0x34e   :  { %v1282_v29 = vpop.eup %1281  ;;  %1291 = vrcp.f32 %v926_v44 }
 0x34f   :  { %1027 = vst [vmem:[#allocation2 + $0xb0] sm:$0xff] %v986_v22  ;;  %v988_v9 = vmul.f32 %v1282_v29, %v2008_v54  ;;  %v928_v11 = vpop.xlane.xlu1 %927 }
 0x350   :  { %v1284_v25 = vpop.eup %1283  ;;  %1293 = vrcp.f32 %v928_v11 }
 0x351   :  { %1028 = vst [vmem:[#allocation2 + $0xb8] sm:$0xff] %v988_v9  ;;  %v982_v48 = vmul.f32 %v1284_v25, %v2014_v43 }
 0x352   :  { %v1286_v50 = vpop.eup %1285  ;;  %v934_v38 = vpop.xlane.xlu0 %933 }
 0x353   :  { %1025 = vst [vmem:[#allocation2 + $0xa0] sm:$0xff] %v982_v48  ;;  %v984_v20 = vmul.f32 %v1286_v50, %v2020_v24  ;;  %1295 = vrcp.f32 %v934_v38 }
 0x354   :  { %v1288_v53 = vpop.eup %1287  ;;  %v936_v37 = vpop.xlane.xlu1 %935 }
 0x355   :  { %1026 = vst [vmem:[#allocation2 + $0xa8] sm:$0xff] %v984_v20  ;;  %v994_v8 = vmul.f32 %v1288_v53, %v2026_v55  ;;  %1297 = vrcp.f32 %v936_v37 }
 0x356   :  { %v1290_v23 = vpop.eup %1289  ;;  %v938_v54 = vpop.xlane.xlu0 %937 }
 0x357   :  { %1031 = vst [vmem:[#allocation2 + $0xd0] sm:$0xff] %v994_v8  ;;  %v996_v5 = vmul.f32 %v1290_v23, %v2031_v12  ;;  %1299 = vrcp.f32 %v938_v54 }
 0x358   :  { %v1292_v59 = vpop.eup %1291  ;;  %v940_v43 = vpop.xlane.xlu1 %939 }
 0x359   :  { %1032 = vst [vmem:[#allocation2 + $0xd8] sm:$0xff] %v996_v5  ;;  %v990_v6 = vmul.f32 %v1292_v59, %v2036_v27  ;;  %1301 = vrcp.f32 %v940_v43 }
 0x35a   :  { %v1294_v24 = vpop.eup %1293 }
 0x35b   :  { %1029 = vst [vmem:[#allocation2 + $0xc0] sm:$0xff] %v990_v6  ;;  %v992_v33 = vmul.f32 %v1294_v24, %v2041_v14 }
 0x35d   :  { %v1296_v47 = vpop.eup %1295  ;;  %1030 = vst [vmem:[#allocation2 + $0xc8] sm:$0xff] %v992_v33 }
 0x35e   :  { %v998_v55 = vmul.f32 %v1296_v47, %v2046_v45 }
 0x35f   :  { %v1298_v2 = vpop.eup %1297 }
 0x360   :  { %1033 = vst [vmem:[#allocation2 + $0xe0] sm:$0xff] %v998_v55  ;;  %v1000_v52 = vmul.f32 %v1298_v2, %v2051_v19 }
 0x361   :  { %v1300_v12 = vpop.eup %1299 }
 0x362   :  { %1034 = vst [vmem:[#allocation2 + $0xe8] sm:$0xff] %v1000_v52  ;;  %v1002_v39 = vmul.f32 %v1300_v12, %v2056_v1 }
 0x363   :  { %v1302_v27 = vpop.eup %1301 }
 0x364   :  { %1035 = vst [vmem:[#allocation2 + $0xf0] sm:$0xff] %v1002_v39  ;;  %v1004_v46 = vmul.f32 %v1302_v27, %v2061_v40 }
 0x366   :  { %1036 = vst [vmem:[#allocation2 + $0xf8] sm:$0xff] %v1004_v46 }
 0x367   :  { %1314 = shalt.err (!%p1311_p4)
}
 0x368   :  { %s1315_s26 = scalar_lea.hbm %s2112_s4, 4096 }
 0x369   :  { %p1316_p5 = scmp.ne.s32.totalorder %s2112_s4, %s1315_s26  ;;  %p1319_p6 = scmp.lt.u32.totalorder %s1315_s26, %s2112_s4 }
 0x36b   :  { %p1321_p7 = pnand %p1319_p6, %p1316_p5 }
 0x36d   :  { %1324 = shalt.err (!%p1321_p7)
}
 0x36e   :  { %s1329_s30 = smov 128   ;;  %s1330_s5 = smov 8  }
 0x36f   :  { %1048 = dma.vmem_to_hbm [thread:$0]  %s1043_s3, 4096, %s2112_s4, [#allocation3], %s1329_s30, %s1329_s30, %s1330_s5  }
 0x370   :  { %1325 = dma.done.wait [#allocation3], 4096  }
 0x371   :  { %1326 = vsyncadd [#allocation3], 4294963200 }
 0x372   :  { %1052 = vsyncpa [#allocation3], 1 }

</bundles_post_ra>
